<compile_context>
chip_gen: v6e
topology: v6e:2x2x1
jax: 0.10.0
libtpu: 0.0.40
codegen_flags: <defaults>
</compile_context>

<pallas_src>
import functools
import math

import jax
import jax.numpy as jnp
from jax.experimental import pallas as pl
from jax.experimental.pallas import tpu as pltpu


DEFAULT_TM = 256
DEFAULT_TN = 512
DEFAULT_TK = 512


def _round_up(a: int, b: int) -> int:
    return ((a + b - 1) // b) * b


def lora_linear_kernel(x_ref, wt_ref, at_ref, bt_ref, bias_ref, o_ref,
                       acc_base, acc_xa):
    """Fused base matmul + LoRA low-rank path.

    Grid = (i over M tiles, j over N tiles, k over K tiles).
    acc_base accumulates x @ W^T over k (reset per (i, j)).
    acc_xa   accumulates x @ A^T over k, computed only at j==0 and reused for j>0.
    """
    j = pl.program_id(1)
    k = pl.program_id(2)
    nk = pl.num_programs(2)

    @pl.when(k == 0)
    def _():
        acc_base[...] = jnp.zeros_like(acc_base)

    @pl.when(jnp.logical_and(j == 0, k == 0))
    def _():
        acc_xa[...] = jnp.zeros_like(acc_xa)

    x = x_ref[...]                                                 # (tm, tk) bf16
    # base path: x @ W^T  (MXU, f32 accumulation)
    acc_base[...] += jnp.dot(x, wt_ref[...], preferred_element_type=jnp.float32)

    # LoRA down-projection: x @ A^T — only once per (i, k); reused across the j sweep.
    @pl.when(j == 0)
    def _():
        acc_xa[...] += jnp.dot(x, at_ref[...], preferred_element_type=jnp.float32)

    @pl.when(k == nk - 1)
    def _():
        # LoRA up-projection (scaling already folded into B^T), add bias + base result.
        lora = jnp.dot(acc_xa[...].astype(bt_ref.dtype), bt_ref[...],
                       preferred_element_type=jnp.float32)
        o_ref[...] = (acc_base[...] + bias_ref[...] + lora).astype(o_ref.dtype)


def prepare_lora_linear_params(w, bias, lora_a, lora_b, scaling, *,
                               tn=DEFAULT_TN, tk=DEFAULT_TK,
                               param_dtype=jnp.bfloat16):
    """One-time weight prep (call once, reuse every forward).

    - transposes torch-layout weights: W(N,K)->W^T(K,N), A(r,K)->A^T(K,r), B(N,r)->B^T(r,N)
    - folds `scaling` into B^T
    - zero-pads the rank dim to a multiple of 128 (lane-dense LoRA path, numerically exact)
    - zero-pads K / N to tile multiples
    - casts MXU operands to bf16 (bias stays f32)
    """
    N, K = w.shape
    r = lora_a.shape[0]
    tk = min(tk, _round_up(K, 128))
    tn = min(tn, _round_up(N, 128))
    Kp = _round_up(K, tk)
    Np = _round_up(N, tn)
    r_pad = _round_up(r, 128)

    wt = jnp.zeros((Kp, Np), param_dtype)
    wt = wt.at[:K, :N].set(jnp.asarray(w).T.astype(param_dtype))

    at = jnp.zeros((Kp, r_pad), param_dtype)
    at = at.at[:K, :r].set(jnp.asarray(lora_a).T.astype(param_dtype))

    bt = jnp.zeros((r_pad, Np), param_dtype)
    bt = bt.at[:r, :N].set((jnp.asarray(lora_b).T.astype(jnp.float32)
                            * float(scaling)).astype(param_dtype))

    b2 = jnp.zeros((1, Np), jnp.float32)
    b2 = b2.at[0, :N].set(jnp.asarray(bias).astype(jnp.float32))

    return dict(wt=wt, at=at, bt=bt, bias=b2,
                K=K, N=N, Kp=Kp, Np=Np, r_pad=r_pad, tn=tn, tk=tk)


def lora_linear(x, params, *, tm=DEFAULT_TM, compute_dtype=jnp.bfloat16,
                vmem_limit_bytes=None):
    """x: (M, K). Returns (M, N) in x.dtype. `params` from prepare_lora_linear_params."""
    M, K = x.shape
    assert K == params["K"], f"x feature dim {K} != weight in_features {params['K']}"
    tn, tk = params["tn"], params["tk"]
    Kp, Np, r_pad, N = params["Kp"], params["Np"], params["r_pad"], params["N"]

    tm = min(tm, _round_up(M, 8))
    Mp = _round_up(M, tm)

    out_dtype = x.dtype
    xp = jnp.zeros((Mp, Kp), compute_dtype)
    xp = xp.at[:M, :K].set(x.astype(compute_dtype))

    grid = (Mp // tm, Np // tn, Kp // tk)

    # A^T block: advance with k only during the j==0 sweep; otherwise stay at block (0, 0)
    # so the (unused) A^T tile is not re-fetched for every j > 0 step.
    def at_index_map(i, j, k):
        return (jnp.where(j == 0, k, 0), 0)

    out = pl.pallas_call(
        lora_linear_kernel,
        out_shape=jax.ShapeDtypeStruct((Mp, Np), out_dtype),
        grid_spec=pltpu.PrefetchScalarGridSpec(
            num_scalar_prefetch=0,
            grid=grid,
            in_specs=[
                pl.BlockSpec((tm, tk), lambda i, j, k: (i, k)),      # x tile
                pl.BlockSpec((tk, tn), lambda i, j, k: (k, j)),      # W^T tile
                pl.BlockSpec((tk, r_pad), at_index_map),             # A^T tile (rank padded)
                pl.BlockSpec((r_pad, tn), lambda i, j, k: (0, j)),   # B^T tile (scaling folded)
                pl.BlockSpec((1, tn), lambda i, j, k: (0, j)),       # bias tile
            ],
            out_specs=pl.BlockSpec((tm, tn), lambda i, j, k: (i, j)),
            scratch_shapes=[
                pltpu.VMEM((tm, tn), jnp.float32),     # base-matmul f32 accumulator
                pltpu.VMEM((tm, r_pad), jnp.float32),  # x @ A^T f32 accumulator (persists over j)
            ],
        ),
        compiler_params=pltpu.CompilerParams(
            # Only i is megacore-sharded: acc_xa is reused across the j sweep, and k reduces.
            dimension_semantics=("parallel", "arbitrary", "arbitrary"),
            # Default tiles use ~5 MiB (fits every generation's default scoped VMEM, incl. v7x's
            # 64 MiB physical). Raise this when sweeping >=1024-sized tiles on v5e/v6e.
            vmem_limit_bytes=vmem_limit_bytes,
        ),
    )(xp, params["wt"], params["at"], params["bt"], params["bias"])

    return out[:M, :N]


def _reference(x, w, bias, lora_a, lora_b, scaling):
    return x @ w.T + bias + ((x @ lora_a.T) @ lora_b.T) * scaling


if __name__ == "__main__":
    # TODO(synk): lora_dropout > 0 (nn.Dropout) not implemented; config uses p=0.0 (Identity).
    key = jax.random.PRNGKey(0)

    # ---- Test 1: small shapes consistent with an nn.Linear wrapped by LoraLinear ----
    batch, seq = 2, 8
    in_features, out_features = 32, 64
    lora_rank, lora_alpha = 8, 16
    scaling = lora_alpha / lora_rank   # use_rslora=False

    kx, kw, kb, ka, kB = jax.random.split(key, 5)
    x = jax.random.normal(kx, (batch, seq, in_features), dtype=jnp.float32)
    w_base = jax.random.normal(kw, (out_features, in_features), dtype=jnp.float32) * 0.05
    bias = jax.random.normal(kb, (out_features,), dtype=jnp.float32) * 0.1
    # Module zero-inits lora_B; use nonzero so the LoRA path is exercised.
    lora_a = jax.random.normal(ka, (lora_rank, in_features), dtype=jnp.float32) * (1.0 / lora_rank)
    lora_b = jax.random.normal(kB, (out_features, lora_rank), dtype=jnp.float32) * 0.05

    params = prepare_lora_linear_params(w_base, bias, lora_a, lora_b, scaling)
    x2d = x.reshape(batch * seq, in_features)
    out = lora_linear(x2d, params).reshape(batch, seq, out_features)
    jax.block_until_ready(out)

    ref = _reference(x, w_base, bias, lora_a, lora_b, scaling)
    err = jnp.max(jnp.abs(out - ref))
    # bf16 operands / f32 accumulation => relaxed tolerance vs the pure-f32 reference.
    assert jnp.allclose(out, ref, atol=2e-2, rtol=2e-2), f"test1 max abs err {err}"

    # ---- Test 2: multi-tile grid (exercises K accumulation + acc_xa reuse across j tiles) ----
    M2, K2, N2, r2 = 32, 256, 256, 8
    k2 = jax.random.split(key, 6)
    x2 = jax.random.normal(k2[0], (M2, K2), dtype=jnp.float32)
    w2 = jax.random.normal(k2[1], (N2, K2), dtype=jnp.float32) * 0.05
    b2 = jax.random.normal(k2[2], (N2,), dtype=jnp.float32) * 0.1
    a2 = jax.random.normal(k2[3], (r2, K2), dtype=jnp.float32) * (1.0 / r2)
    B2 = jax.random.normal(k2[4], (N2, r2), dtype=jnp.float32) * 0.05

    params2 = prepare_lora_linear_params(w2, b2, a2, B2, scaling, tn=128, tk=128)
    out2 = lora_linear(x2, params2, tm=16)   # grid = (2, 2, 2)
    jax.block_until_ready(out2)

    ref2 = _reference(x2, w2, b2, a2, B2, scaling)
    err2 = jnp.max(jnp.abs(out2 - ref2))
    assert jnp.allclose(out2, ref2, atol=5e-2, rtol=5e-2), f"test2 max abs err {err2}"

    print("KERNEL_OK")
</pallas_src>

<mosaic_0001>
module attributes {stable_mosaic.version = 11 : i64} {
  func.func @lora_linear_kernel(%arg0: i32, %arg1: i32, %arg2: i32, %arg3: memref<16x128xbf16, #tpu.memory_space<vmem>>, %arg4: memref<128x128xbf16, #tpu.memory_space<vmem>>, %arg5: memref<128x128xbf16, #tpu.memory_space<vmem>>, %arg6: memref<128x128xbf16, #tpu.memory_space<vmem>>, %arg7: memref<1x128xf32, #tpu.memory_space<vmem>>, %arg8: memref<16x128xf32, #tpu.memory_space<vmem>>, %arg9: memref<16x128xf32, #tpu.memory_space<vmem>>, %arg10: memref<16x128xf32, #tpu.memory_space<vmem>>) attributes {dimension_semantics = [#tpu.dimension_semantics<parallel>, #tpu.dimension_semantics<arbitrary>, #tpu.dimension_semantics<arbitrary>], iteration_bounds = array<i64: 1, 1, 1>, scalar_prefetch = 0 : i64, scratch_operands = 2 : i64, tpu.core_type = #tpu.core_type<tc>, window_params = [{transform_indices = @transform_0, window_bounds = array<i64: 16, 128>}, {transform_indices = @transform_1, window_bounds = array<i64: 128, 128>}, {transform_indices = @transform_2, window_bounds = array<i64: 128, 128>}, {transform_indices = @transform_3, window_bounds = array<i64: 128, 128>}, {transform_indices = @transform_4, window_bounds = array<i64: 1, 128>}, {transform_indices = @transform_5, window_bounds = array<i64: 16, 128>}]} {
    %c0_i32 = arith.constant 0 : i32
    %0 = arith.cmpi eq, %arg2, %c0_i32 : i32
    %1 = arith.extui %0 : i1 to i32
    %c0_i32_0 = arith.constant 0 : i32
    %2 = arith.cmpi ne, %1, %c0_i32_0 : i32
    scf.if %2 {
      %cst_15 = arith.constant 0.000000e+00 : f32
      %20 = vector.broadcast %cst_15 : f32 to vector<16x128xf32>
      %c0_16 = arith.constant 0 : index
      %c0_17 = arith.constant 0 : index
      %21 = vector.load %arg9[%c0_16, %c0_17] : memref<16x128xf32, #tpu.memory_space<vmem>>, vector<16x128xf32>
      tpu.vector_store %arg9[%c0_16, %c0_17], %20 {strides = array<i32>} : memref<16x128xf32, #tpu.memory_space<vmem>>, vector<16x128xf32>,
    } else {
    }
    %c0_i32_1 = arith.constant 0 : i32
    %3 = arith.cmpi eq, %arg1, %c0_i32_1 : i32
    %c0_i32_2 = arith.constant 0 : i32
    %4 = arith.cmpi eq, %arg2, %c0_i32_2 : i32
    %5 = arith.andi %3, %4 : i1
    %6 = arith.extui %5 : i1 to i32
    %c0_i32_3 = arith.constant 0 : i32
    %7 = arith.cmpi ne, %6, %c0_i32_3 : i32
    scf.if %7 {
      %cst_15 = arith.constant 0.000000e+00 : f32
      %20 = vector.broadcast %cst_15 : f32 to vector<16x128xf32>
      %c0_16 = arith.constant 0 : index
      %c0_17 = arith.constant 0 : index
      %21 = vector.load %arg10[%c0_16, %c0_17] : memref<16x128xf32, #tpu.memory_space<vmem>>, vector<16x128xf32>
      tpu.vector_store %arg10[%c0_16, %c0_17], %20 {strides = array<i32>} : memref<16x128xf32, #tpu.memory_space<vmem>>, vector<16x128xf32>,
    } else {
    }
    %c0 = arith.constant 0 : index
    %c0_4 = arith.constant 0 : index
    %8 = vector.load %arg3[%c0, %c0_4] : memref<16x128xbf16, #tpu.memory_space<vmem>>, vector<16x128xbf16>
    %c0_5 = arith.constant 0 : index
    %c0_6 = arith.constant 0 : index
    %9 = vector.load %arg9[%c0_5, %c0_6] : memref<16x128xf32, #tpu.memory_space<vmem>>, vector<16x128xf32>
    %c0_7 = arith.constant 0 : index
    %c0_8 = arith.constant 0 : index
    %10 = vector.load %arg4[%c0_7, %c0_8] : memref<128x128xbf16, #tpu.memory_space<vmem>>, vector<128x128xbf16>
    %cst = arith.constant dense<0.000000e+00> : vector<16x128xf32>
    %11 = tpu.matmul %8, %10, %cst {dimension_numbers = #tpu.dot_dimension_numbers<[1], [0], [0], [1], [0, 0, 1, 1], [], []>} : vector<16x128xbf16>, vector<128x128xbf16>, vector<16x128xf32> -> vector<16x128xf32>
    %12 = arith.addf %9, %11 : vector<16x128xf32>
    %c0_9 = arith.constant 0 : index
    %c0_10 = arith.constant 0 : index
    %13 = vector.load %arg9[%c0_9, %c0_10] : memref<16x128xf32, #tpu.memory_space<vmem>>, vector<16x128xf32>
    tpu.vector_store %arg9[%c0_9, %c0_10], %12 {strides = array<i32>} : memref<16x128xf32, #tpu.memory_space<vmem>>, vector<16x128xf32>,
    %c0_i32_11 = arith.constant 0 : i32
    %14 = arith.cmpi eq, %arg1, %c0_i32_11 : i32
    %15 = arith.extui %14 : i1 to i32
    %c0_i32_12 = arith.constant 0 : i32
    %16 = arith.cmpi ne, %15, %c0_i32_12 : i32
    scf.if %16 {
      %c0_15 = arith.constant 0 : index
      %c0_16 = arith.constant 0 : index
      %20 = vector.load %arg10[%c0_15, %c0_16] : memref<16x128xf32, #tpu.memory_space<vmem>>, vector<16x128xf32>
      %c0_17 = arith.constant 0 : index
      %c0_18 = arith.constant 0 : index
      %21 = vector.load %arg5[%c0_17, %c0_18] : memref<128x128xbf16, #tpu.memory_space<vmem>>, vector<128x128xbf16>
      %cst_19 = arith.constant dense<0.000000e+00> : vector<16x128xf32>
      %22 = tpu.matmul %8, %21, %cst_19 {dimension_numbers = #tpu.dot_dimension_numbers<[1], [0], [0], [1], [0, 0, 1, 1], [], []>} : vector<16x128xbf16>, vector<128x128xbf16>, vector<16x128xf32> -> vector<16x128xf32>
      %23 = arith.addf %20, %22 : vector<16x128xf32>
      %c0_20 = arith.constant 0 : index
      %c0_21 = arith.constant 0 : index
      %24 = vector.load %arg10[%c0_20, %c0_21] : memref<16x128xf32, #tpu.memory_space<vmem>>, vector<16x128xf32>
      tpu.vector_store %arg10[%c0_20, %c0_21], %23 {strides = array<i32>} : memref<16x128xf32, #tpu.memory_space<vmem>>, vector<16x128xf32>,
    } else {
    }
    %c0_i32_13 = arith.constant 0 : i32
    %17 = arith.cmpi eq, %arg2, %c0_i32_13 : i32
    %18 = arith.extui %17 : i1 to i32
    %c0_i32_14 = arith.constant 0 : i32
    %19 = arith.cmpi ne, %18, %c0_i32_14 : i32
    scf.if %19 {
      %c0_15 = arith.constant 0 : index
      %c0_16 = arith.constant 0 : index
      %20 = vector.load %arg10[%c0_15, %c0_16] : memref<16x128xf32, #tpu.memory_space<vmem>>, vector<16x128xf32>
      %21 = arith.truncf %20 : vector<16x128xf32> to vector<16x128xbf16>
      %c0_17 = arith.constant 0 : index
      %c0_18 = arith.constant 0 : index
      %22 = vector.load %arg6[%c0_17, %c0_18] : memref<128x128xbf16, #tpu.memory_space<vmem>>, vector<128x128xbf16>
      %cst_19 = arith.constant dense<0.000000e+00> : vector<16x128xf32>
      %23 = tpu.matmul %21, %22, %cst_19 {dimension_numbers = #tpu.dot_dimension_numbers<[1], [0], [0], [1], [0, 0, 1, 1], [], []>} : vector<16x128xbf16>, vector<128x128xbf16>, vector<16x128xf32> -> vector<16x128xf32>
      %c0_20 = arith.constant 0 : index
      %c0_21 = arith.constant 0 : index
      %24 = vector.load %arg9[%c0_20, %c0_21] : memref<16x128xf32, #tpu.memory_space<vmem>>, vector<16x128xf32>
      %c0_22 = arith.constant 0 : index
      %c0_23 = arith.constant 0 : index
      %25 = vector.load %arg7[%c0_22, %c0_23] : memref<1x128xf32, #tpu.memory_space<vmem>>, vector<1x128xf32>
      %26 = vector.broadcast %25 : vector<1x128xf32> to vector<16x128xf32>
      %27 = arith.addf %24, %26 : vector<16x128xf32>
      %28 = arith.addf %27, %23 : vector<16x128xf32>
      %c0_24 = arith.constant 0 : index
      %c0_25 = arith.constant 0 : index
      %29 = vector.load %arg8[%c0_24, %c0_25] : memref<16x128xf32, #tpu.memory_space<vmem>>, vector<16x128xf32>
      tpu.vector_store %arg8[%c0_24, %c0_25], %28 {strides = array<i32>} : memref<16x128xf32, #tpu.memory_space<vmem>>, vector<16x128xf32>,
    } else {
    }
    return
  }
  func.func @transform_0(%arg0: i32, %arg1: i32, %arg2: i32) -> (i32, i32) {
    %c0_i32 = arith.constant 0 : i32
    return %arg0, %arg2 : i32, i32
  }
  func.func @transform_1(%arg0: i32, %arg1: i32, %arg2: i32) -> (i32, i32) {
    %c0_i32 = arith.constant 0 : i32
    return %arg2, %arg1 : i32, i32
  }
  func.func @transform_2(%arg0: i32, %arg1: i32, %arg2: i32) -> (i32, i32) {
    %c0_i32 = arith.constant 0 : i32
    %0 = arith.cmpi eq, %arg1, %c0_i32 : i32
    %c0_i32_0 = arith.constant 0 : i32
    %1 = arith.select %0, %arg2, %c0_i32_0 : i32
    %c0_i32_1 = arith.constant 0 : i32
    %c0_i32_2 = arith.constant 0 : i32
    return %1, %c0_i32_1 : i32, i32
  }
  func.func @transform_3(%arg0: i32, %arg1: i32, %arg2: i32) -> (i32, i32) {
    %c0_i32 = arith.constant 0 : i32
    %c0_i32_0 = arith.constant 0 : i32
    return %c0_i32, %arg1 : i32, i32
  }
  func.func @transform_4(%arg0: i32, %arg1: i32, %arg2: i32) -> (i32, i32) {
    %c0_i32 = arith.constant 0 : i32
    %c0_i32_0 = arith.constant 0 : i32
    return %c0_i32, %arg1 : i32, i32
  }
  func.func @transform_5(%arg0: i32, %arg1: i32, %arg2: i32) -> (i32, i32) {
    %c0_i32 = arith.constant 0 : i32
    return %arg0, %arg1 : i32, i32
  }
}

</mosaic_0001>

<bundles_post_ra>
// kernel: tpu_custom_call.1
= control target key start
LH: loop header
LB: loop body
LE: loop exit
PB: predicated region body
PF: predicated region fallthrough
CT: control target
= control target key end

     0   :  { %10 = vsyncpa [#allocation5], 0  ;;  %s836_s0 = inlined_call_operand.hbm [shape: bf16[16,128], index: 0, kind: input, shape index: {}]   ;;  %s837_s1 = inlined_call_operand.hbm [shape: bf16[128,128], index: 1, kind: input, shape index: {}]   ;;  %s838_s2 = inlined_call_operand.hbm [shape: bf16[128,128], index: 2, kind: input, shape index: {}]   ;;  %s839_s3 = inlined_call_operand.hbm [shape: bf16[128,128], index: 3, kind: input, shape index: {}]   ;;  %s840_s4 = inlined_call_operand.vmem [shape: f32[1,128], index: 4, kind: input, shape index: {}]   ;;  %s841_s5 = inlined_call_operand.hbm [shape: f32[16,128], index: 5, kind: output, shape index: {}]  }
   0x1   :  { %11 = vsyncpa [#allocation8], 0 }
   0x2   :  { %12 = vsyncpa [#allocation11], 0 }
   0x3   :  { %13 = vsyncpa [#allocation6], 0  ;;  %s735_s18 = smov [#allocation7]   ;;  %s736_s20 = smov [#allocation4]  }
   0x4   :  { %s31_s19 = sshll.u32 %s735_s18, 4  ;;  %s19_s21 = sshll.u32 %s736_s20, 4  ;;  %s32_s19 = int_to_ptr.vmem [resolvable:$true] %s31_s19  ;;  %s20_s21 = int_to_ptr.vmem [resolvable:$true] %s19_s21 }
   0x5   :  { %s635_s22 = scalar_lea.vmem %s32_s19, 1024  ;;  %p640_p1 = scmp.lt.s32.totalorder %s32_s19, %s32_s19 }
   0x6   :  { %p636_p0 = scmp.ne.s32.totalorder %s32_s19, %s635_s22  ;;  %p641_p2 = scmp.lt.s32.totalorder %s635_s22, %s635_s22 }
   0x8   :  { %p642_p3 = por %p641_p2, %p640_p1 }
   0xa   :  { %p643_p4 = pnand %p642_p3, %p636_p0 }
   0xc   :  { %646 = shalt.err (!%p643_p4)
}
   0xd   :  { %s737_s23 = smov 64   ;;  %s738_s24 = smov 4  }
   0xe   :  { %37 = dma.hbm_to_vmem [thread:$0]  %s837_s1, 1024, %s32_s19, [#allocation8], %s737_s23, %s737_s23, %s738_s24  }
   0xf   :  { %s655_s27 = scalar_lea.vmem %s20_s21, 128  ;;  %p660_p6 = scmp.lt.s32.totalorder %s20_s21, %s20_s21 }
  0x10   :  { %p656_p5 = scmp.ne.s32.totalorder %s20_s21, %s655_s27  ;;  %p661_p7 = scmp.lt.s32.totalorder %s655_s27, %s655_s27 }
  0x12   :  { %p662_p8 = por %p661_p7, %p660_p6 }
  0x14   :  { %p663_p9 = pnand %p662_p8, %p656_p5 }
  0x16   :  { %666 = shalt.err (!%p663_p9)
}
  0x17   :  { %25 = dma.hbm_to_vmem [thread:$0]  %s836_s0, 128, %s20_s21, [#allocation5], %s737_s23, %s737_s23, %s738_s24  }
  0x18   :  { %s739_s30 = smov [#allocation9]   ;;  %s740_s7 = smov [#allocation10]  }
  0x19   :  { %s48_s6 = sshll.u32 %s739_s30, 4  ;;  %s60_s8 = sshll.u32 %s740_s7, 4  ;;  %s49_s6 = int_to_ptr.vmem [resolvable:$true] %s48_s6  ;;  %s61_s8 = int_to_ptr.vmem [resolvable:$true] %s60_s8 }
  0x1a   :  { %s675_s1 = scalar_lea.vmem %s49_s6, 1024  ;;  %p680_p11 = scmp.lt.s32.totalorder %s49_s6, %s49_s6 }
  0x1b   :  { %p676_p10 = scmp.ne.s32.totalorder %s49_s6, %s675_s1  ;;  %p681_p12 = scmp.lt.s32.totalorder %s675_s1, %s675_s1 }
  0x1d   :  { %p682_p13 = por %p681_p12, %p680_p11 }
  0x1f   :  { %p683_p0 = pnand %p682_p13, %p676_p10 }
  0x21   :  { %686 = shalt.err (!%p683_p0)
}
  0x22   :  { %54 = dma.hbm_to_vmem [thread:$0]  %s838_s2, 1024, %s49_s6, [#allocation8], %s737_s23, %s737_s23, %s738_s24  }
  0x23   :  { %s695_s0 = scalar_lea.vmem %s61_s8, 1024  ;;  %p700_p2 = scmp.lt.s32.totalorder %s61_s8, %s61_s8 }
  0x24   :  { %p696_p1 = scmp.ne.s32.totalorder %s61_s8, %s695_s0  ;;  %p701_p3 = scmp.lt.s32.totalorder %s695_s0, %s695_s0 }
  0x26   :  { %p702_p4 = por %p701_p3, %p700_p2 }
  0x28   :  { %p703_p5 = pnand %p702_p4, %p696_p1 }
  0x2a   :  { %706 = shalt.err (!%p703_p5)
}
  0x2b   :  { %66 = dma.hbm_to_vmem [thread:$0]  %s839_s3, 1024, %s61_s8, [#allocation11], %s737_s23, %s737_s23, %s738_s24  }
  0x2c   :  { %727 = dma.done.wait [#allocation5], 128  }
  0x2d   :  { %728 = vsyncadd [#allocation5], 4294967168 }
  0x2e   :  { %729 = dma.done.wait [#allocation8], 2048  }
  0x2f   :  { %730 = vsyncadd [#allocation8], 4294965248 }
  0x30   :  { %731 = dma.done.wait [#allocation11], 1024  }
  0x31   :  { %732 = vsyncadd [#allocation11], 4294966272  ;;  %v741_v0 = vmov 0.0   ;;  %vm742_vm0 = vmmov 0   ;;  %v602_v1 = vld [vmem:[#allocation9 + $0x38] sm:$0xff]   ;;  %v603_v2 = vld [vmem:[#allocation9 + $0x30] sm:$0xff]  }
  0x32   :  { %551 = vmatprep.subr.bf16.mxu1 %v741_v0  ;;  %567 = vmatprep.mubr.msk.bf16.mxu1 %vm742_vm0, %v741_v0  ;;  %v604_v3 = vld [vmem:[#allocation9 + $0x28] sm:$0xff]   ;;  %v611_v4 = vld [vmem:[#allocation7 + $0x38] sm:$0xff]   ;;  %v605_v5 = vld [vmem:[#allocation9 + $0x20] sm:$0xff]   ;;  %s743_s13 = smov [#allocation12]  }
  0x33   :  { %531 = vmatprep.subr.bf16.mxu0 %v741_v0  ;;  %547 = vmatprep.mubr.msk.bf16.mxu0 %vm742_vm0, %v741_v0  ;;  %v612_v6 = vld [vmem:[#allocation7 + $0x30] sm:$0xff]   ;;  %v606_v7 = vld [vmem:[#allocation9 + $0x18] sm:$0xff]   ;;  %v613_v8 = vld [vmem:[#allocation7 + $0x28] sm:$0xff]   ;;  %s462_s14 = sshll.u32 %s743_s13, 4  ;;  %s463_s14 = int_to_ptr.vmem [resolvable:$true] %s462_s14 }
  0x34   :  { %552 = vmatpush3.bf16.msra.mxu1 %v602_v1  ;;  %532 = vmatpush3.bf16.msra.mxu0 %v611_v4  ;;  %v607_v9 = vld [vmem:[#allocation9 + $0x10] sm:$0xff]   ;;  %v614_v10 = vld [vmem:[#allocation7 + $0x20] sm:$0xff]   ;;  %v608_v11 = vld [vmem:[#allocation9 + $0x8] sm:$0xff]   ;;  %s707_s15 = scalar_lea.vmem %s463_s14, 256  ;;  %p712_p7 = scmp.lt.s32.totalorder %s463_s14, %s463_s14 }
  0x35   :  { %553 = vmatprep.subr.bf16.mxu1 %v741_v0  ;;  %533 = vmatprep.subr.bf16.mxu0 %v741_v0  ;;  %v615_v12 = vld [vmem:[#allocation7 + $0x18] sm:$0xff]   ;;  %v609_v13 = vld [vmem:[#allocation9] sm:$0xff]   ;;  %v616_v14 = vld [vmem:[#allocation7 + $0x10] sm:$0xff]   ;;  %p708_p6 = scmp.ne.s32.totalorder %s463_s14, %s707_s15  ;;  %p713_p8 = scmp.lt.s32.totalorder %s707_s15, %s707_s15 }
  0x36   :  { %v610_v15 = vld [vmem:[#allocation4] sm:$0xff]   ;;  %v617_v16 = vld [vmem:[#allocation7 + $0x8] sm:$0xff]   ;;  %v618_v17 = vld [vmem:[#allocation7] sm:$0xff]  }
  0x37   :  { %v619_v18 = vld [vmem:[#allocation10 + $0x38] sm:$0xff]   ;;  %v620_v19 = vld [vmem:[#allocation10 + $0x30] sm:$0xff]   ;;  %v621_v20 = vld [vmem:[#allocation10 + $0x28] sm:$0xff]   ;;  %p714_p9 = por %p713_p8, %p712_p7 }
  0x38   :  { %554 = vmatpush3.bf16.msra.mxu1 %v603_v2  ;;  %534 = vmatpush3.bf16.msra.mxu0 %v612_v6  ;;  %v622_v21 = vld [vmem:[#allocation10 + $0x20] sm:$0xff]   ;;  %v623_v22 = vld [vmem:[#allocation10 + $0x18] sm:$0xff]   ;;  %v624_v23 = vld [vmem:[#allocation10 + $0x10] sm:$0xff]  }
  0x39   :  { %555 = vmatprep.subr.bf16.mxu1 %v741_v0  ;;  %535 = vmatprep.subr.bf16.mxu0 %v741_v0  ;;  %v625_v24 = vld [vmem:[#allocation10 + $0x8] sm:$0xff]   ;;  %v626_v25 = vld [vmem:[#allocation10] sm:$0xff]   ;;  %v503_v35 = vld [vmem:[%s840_s4] ss:$0 sm:$0xff]  ;;  %p715_p10 = pnand %p714_p9, %p708_p6 }
  0x3c   :  { %556 = vmatpush3.bf16.msra.mxu1 %v604_v3  ;;  %536 = vmatpush3.bf16.msra.mxu0 %v613_v8 }
  0x3d   :  { %557 = vmatprep.subr.bf16.mxu1 %v741_v0  ;;  %537 = vmatprep.subr.bf16.mxu0 %v741_v0 }
  0x40   :  { %558 = vmatpush3.bf16.msra.mxu1 %v605_v5  ;;  %538 = vmatpush3.bf16.msra.mxu0 %v614_v10 }
  0x41   :  { %559 = vmatprep.subr.bf16.mxu1 %v741_v0  ;;  %539 = vmatprep.subr.bf16.mxu0 %v741_v0 }
  0x44   :  { %560 = vmatpush3.bf16.msra.mxu1 %v606_v7  ;;  %540 = vmatpush3.bf16.msra.mxu0 %v615_v12 }
  0x45   :  { %561 = vmatprep.subr.bf16.mxu1 %v741_v0  ;;  %541 = vmatprep.subr.bf16.mxu0 %v741_v0 }
  0x48   :  { %562 = vmatpush3.bf16.msra.mxu1 %v607_v9  ;;  %542 = vmatpush3.bf16.msra.mxu0 %v616_v14 }
  0x49   :  { %563 = vmatprep.subr.bf16.mxu1 %v741_v0  ;;  %543 = vmatprep.subr.bf16.mxu0 %v741_v0 }
  0x4c   :  { %564 = vmatpush3.bf16.msra.mxu1 %v608_v11  ;;  %544 = vmatpush3.bf16.msra.mxu0 %v617_v16 }
  0x4d   :  { %565 = vmatprep.subr.bf16.mxu1 %v741_v0  ;;  %545 = vmatprep.subr.bf16.mxu0 %v741_v0 }
  0x50   :  { %566 = vmatpush3.bf16.msra.mxu1 %v609_v13  ;;  %546 = vmatpush3.bf16.msra.mxu0 %v618_v17 }
  0x51   :  { %571 = vmatprep.subr.bf16.mxu0 %v741_v0 }
  0x53   :  { %568 = vmatmul.mubr.bf16.vlgmr.msra.gmra.mxu1 %v610_v15  ;;  %548 = vmatmul.mubr.bf16.vlgmr.msra.gmra.mxu0 %v610_v15 }
  0x54   :  { %572 = vmatpush3.bf16.msra.mxu0 %v619_v18  ;;  %587 = vmatprep.mubr.msk.bf16.mxu0 %vm742_vm0, %v741_v0 }
  0x55   :  { %573 = vmatprep.subr.bf16.mxu0 %v741_v0 }
  0x58   :  { %574 = vmatpush3.bf16.msra.mxu0 %v620_v19 }
  0x59   :  { %575 = vmatprep.subr.bf16.mxu0 %v741_v0 }
  0x5c   :  { %576 = vmatpush3.bf16.msra.mxu0 %v621_v20 }
  0x5d   :  { %577 = vmatprep.subr.bf16.mxu0 %v741_v0 }
  0x60   :  { %578 = vmatpush3.bf16.msra.mxu0 %v622_v21 }
  0x61   :  { %579 = vmatprep.subr.bf16.mxu0 %v741_v0 }
  0x64   :  { %580 = vmatpush3.bf16.msra.mxu0 %v623_v22 }
  0x65   :  { %581 = vmatprep.subr.bf16.mxu0 %v741_v0 }
  0x68   :  { %582 = vmatpush3.bf16.msra.mxu0 %v624_v23 }
  0x69   :  { %583 = vmatprep.subr.bf16.mxu0 %v741_v0 }
  0x6c   :  { %584 = vmatpush3.bf16.msra.mxu0 %v625_v24 }
  0x6d   :  { %585 = vmatprep.subr.bf16.mxu0 %v741_v0 }
  0x70   :  { %586 = vmatpush3.bf16.msra.mxu0 %v626_v25 }
 0x113   :  { %v320_v26 = vpop.f32.mrf.mxu1  ;;  %v206_v31 = vpop.f32.mrf.mxu0 }
 0x114   :  { %v451_v36 = vadd.f32 %v503_v35, %v206_v31 }
 0x115   :  { %v569_v27 = vpop.f32.mrf.mxu1  ;;  %v549_v32 = vpop.f32.mrf.mxu0 }
 0x117   :  { %v323_v28 = vpop.f32.mrf.mxu1  ;;  %v209_v33 = vpop.f32.mrf.mxu0 }
 0x118   :  { %v336_v29 = vpack.c.bf16 %v323_v28, %v320_v26  ;;  %v452_v40 = vadd.f32 %v503_v35, %v209_v33 }
 0x119   :  { %v570_v30 = vpop.f32.mrf.mxu1  ;;  %v550_v34 = vpop.f32.mrf.mxu0 }
 0x11a   :  { %588 = vmatmul.mubr.bf16.vlgmr.msra.gmra.mxu0 %v336_v29 }
 0x1da   :  { %v435_v37 = vpop.f32.mrf.mxu0 }
 0x1db   :  { %v453_v38 = vadd.f32 %v451_v36, %v435_v37 }
 0x1dc   :  { %v589_v39 = vpop.f32.mrf.mxu0 }
 0x1dd   :  { %455 = vst [vmem:[#allocation12] sm:$0xff] %v453_v38 }
 0x1de   :  { %v438_v41 = vpop.f32.mrf.mxu0 }
 0x1df   :  { %v454_v42 = vadd.f32 %v452_v40, %v438_v41 }
 0x1e0   :  { %v590_v43 = vpop.f32.mrf.mxu0 }
 0x1e1   :  { %456 = vst [vmem:[#allocation12 + $0x8] sm:$0xff] %v454_v42 }
 0x1e2   :  { %718 = shalt.err (!%p715_p10)
}
 0x1e3   :  { %s744_s4 = smov 128   ;;  %s745_s16 = smov 8  }
 0x1e4   :  { %468 = dma.vmem_to_hbm [thread:$0]  %s463_s14, 256, %s841_s5, [#allocation6], %s744_s4, %s744_s4, %s745_s16  }
 0x1e5   :  { %733 = dma.done.wait [#allocation6], 256  }
 0x1e6   :  { %734 = vsyncadd [#allocation6], 4294967040 }
 0x1e7   :  { %472 = vsyncpa [#allocation5], 1 }
 0x1e8   :  { %473 = vsyncpa [#allocation8], 1 }
 0x1e9   :  { %474 = vsyncpa [#allocation11], 1 }
 0x1ea   :  { %475 = vsyncpa [#allocation6], 1 }

</bundles_post_ra>
